<compile_context>
chip_gen: v6e
topology: v6e:2x2x1
jax: 0.10.0
libtpu: 0.0.40
codegen_flags: <defaults>
</compile_context>

<pallas_src>
import functools
import math

import jax
import jax.numpy as jnp
import numpy as np
from jax.experimental import pallas as pl
from jax.experimental.pallas import tpu as pltpu

_LOG_2PI = math.log(2.0 * math.pi)
_LOGSTD_MIN = -10.0
_LOGSTD_MAX = 2.0


def _round_up(x, m):
    return (x + m - 1) // m * m


def _sac_body(x, w1, b1, wh, bh, eps, a_dim, out_cols):
    """Shared trunk + fused heads + distribution math. eps is None on the deterministic path."""
    # Trunk MLP: Linear + ReLU   (MLP(input_dim, hidden_dim[:-1], activation=ReLU))
    h = jnp.maximum(jnp.dot(x, w1, preferred_element_type=jnp.float32) + b1, 0.0)

    # Fused mu / logstd heads: one (H, 2*a_dim) matmul, then slice.
    heads = jnp.dot(h, wh, preferred_element_type=jnp.float32) + bh
    mu = jnp.tanh(heads[:, :a_dim])                                   # tanh in forward()
    logstd = jnp.clip(heads[:, a_dim:2 * a_dim], _LOGSTD_MIN, _LOGSTD_MAX)

    sum_logstd = jnp.sum(logstd, axis=-1, keepdims=True)

    if eps is None:
        # deterministic: a = mu, (a - mu)/std == 0
        a = mu
        quad = jnp.zeros_like(sum_logstd)
    else:
        # rsample: a = mu + std * eps
        a = mu + jnp.exp(logstd) * eps
        quad = jnp.sum(eps * eps, axis=-1, keepdims=True)

    # MultivariateNormal(mu, diag(std^2)): log_prob(a) and entropy
    logp = -0.5 * quad - sum_logstd - 0.5 * a_dim * _LOG_2PI
    ent = 0.5 * a_dim * (1.0 + _LOG_2PI) + sum_logstd

    # Pack into one lane-dense (TB, out_cols) slab -> single unmasked store.
    parts = [a, logp, ent]
    pad = out_cols - (a_dim + 2)
    if pad > 0:
        parts.append(jnp.zeros((a.shape[0], pad), jnp.float32))
    return jnp.concatenate(parts, axis=-1)


def _sac_policy_kernel(x_ref, w1_ref, b1_ref, wh_ref, bh_ref, eps_ref, out_ref, *,
                       a_dim, out_cols):
    out_ref[...] = _sac_body(x_ref[...], w1_ref[...], b1_ref[...],
                             wh_ref[...], bh_ref[...], eps_ref[...],
                             a_dim, out_cols)


def _sac_policy_kernel_det(x_ref, w1_ref, b1_ref, wh_ref, bh_ref, out_ref, *,
                           a_dim, out_cols):
    out_ref[...] = _sac_body(x_ref[...], w1_ref[...], b1_ref[...],
                             wh_ref[...], bh_ref[...], None,
                             a_dim, out_cols)


def init_params(key, input_dim, hidden_dim, a_dim):
    """Deterministic PyTorch-Linear-style init (uniform +/- 1/sqrt(fan_in)).

    Mirrors SAC_Policy.__init__ with hidden_dim[-2] == hidden_dim[-1]:
      trunk  = MLP(input_dim, hidden_dim[:-1])  -> single Linear(input_dim, H) + ReLU
      mu     = MLP(hidden_dim[-1], (a_dim,))    -> Linear(H, a_dim)
      logstd = MLP(hidden_dim[-1], (a_dim,))    -> Linear(H, a_dim)
    The two heads are additionally packed into one (H, 2*a_dim) weight for the kernel.
    """
    assert hidden_dim[-2] == hidden_dim[-1], "trunk output must match head input"
    H = hidden_dim[-1]
    ks = jax.random.split(key, 6)

    def lin(kw, kb, fan_in, fan_out):
        bound = 1.0 / math.sqrt(fan_in)
        w = jax.random.uniform(kw, (fan_in, fan_out), jnp.float32, -bound, bound)
        b = jax.random.uniform(kb, (1, fan_out), jnp.float32, -bound, bound)
        return w, b

    w1, b1 = lin(ks[0], ks[1], input_dim, H)
    w_mu, b_mu = lin(ks[2], ks[3], H, a_dim)
    w_ls, b_ls = lin(ks[4], ks[5], H, a_dim)
    return {
        "w1": w1, "b1": b1,
        "w_mu": w_mu, "b_mu": b_mu, "w_ls": w_ls, "b_ls": b_ls,
        # fused heads, packed once at init time
        "w_heads": jnp.concatenate([w_mu, w_ls], axis=1),
        "b_heads": jnp.concatenate([b_mu, b_ls], axis=1),
    }


def sac_policy_forward(state, params, eps=None, deterministic=False):
    """Returns (a, {'logprobs': (B,1), 'entropy': (B,)}) like SAC_Policy.forward.

    If `deterministic` or `eps is None`, the deterministic path a = mu is taken
    (log_prob / entropy evaluated at eps = 0) without shipping a zero eps tensor.
    """
    if state.ndim in (1, 3):
        state = state[None, ...]
    x = state.reshape(state.shape[0], -1).astype(jnp.float32)
    B, input_dim = x.shape
    a_dim = params["w_heads"].shape[1] // 2
    out_cols = max(128, _round_up(a_dim + 2, 128))    # lane-dense packed output

    # Batch tile: multiple of 8 (f32 sublane), capped at 128 MXU rows.
    TB = min(_round_up(B, 8), 128)
    B_pad = _round_up(B, TB)
    if B_pad != B:
        x = jnp.pad(x, ((0, B_pad - B), (0, 0)))
    grid = (B_pad // TB,)

    x_spec = pl.BlockSpec((TB, input_dim), lambda i: (i, 0))
    out_spec = pl.BlockSpec((TB, out_cols), lambda i: (i, 0))
    out_shape = jax.ShapeDtypeStruct((B_pad, out_cols), jnp.float32)

    def resident(arr):  # weights/biases stay VMEM-resident across grid steps
        return pl.BlockSpec(arr.shape, lambda i: (0, 0))

    cparams = pltpu.CompilerParams(dimension_semantics=("parallel",))

    use_eps = (not deterministic) and (eps is not None)
    if use_eps:
        eps = eps.astype(jnp.float32)
        if B_pad != B:
            eps = jnp.pad(eps, ((0, B_pad - B), (0, 0)))
        kernel = functools.partial(_sac_policy_kernel, a_dim=a_dim, out_cols=out_cols)
        packed = pl.pallas_call(
            kernel,
            out_shape=out_shape,
            grid=grid,
            in_specs=[x_spec,
                      resident(params["w1"]), resident(params["b1"]),
                      resident(params["w_heads"]), resident(params["b_heads"]),
                      pl.BlockSpec((TB, a_dim), lambda i: (i, 0))],
            out_specs=out_spec,
            compiler_params=cparams,
        )(x, params["w1"], params["b1"], params["w_heads"], params["b_heads"], eps)
    else:
        kernel = functools.partial(_sac_policy_kernel_det, a_dim=a_dim, out_cols=out_cols)
        packed = pl.pallas_call(
            kernel,
            out_shape=out_shape,
            grid=grid,
            in_specs=[x_spec,
                      resident(params["w1"]), resident(params["b1"]),
                      resident(params["w_heads"]), resident(params["b_heads"])],
            out_specs=out_spec,
            compiler_params=cparams,
        )(x, params["w1"], params["b1"], params["w_heads"], params["b_heads"])

    packed = packed[:B]
    a = packed[:, :a_dim]
    logp = packed[:, a_dim:a_dim + 1]
    ent = packed[:, a_dim + 1]
    return a, {"logprobs": logp, "entropy": ent}


def _reference_forward(state, params, eps):
    """Pure-JAX reference for correctness checking (eps may be zeros for deterministic)."""
    x = state.reshape(state.shape[0], -1).astype(jnp.float32)
    h = jnp.maximum(x @ params["w1"] + params["b1"], 0.0)
    mu = jnp.tanh(h @ params["w_mu"] + params["b_mu"])
    logstd = jnp.clip(h @ params["w_ls"] + params["b_ls"], _LOGSTD_MIN, _LOGSTD_MAX)
    std = jnp.exp(logstd)
    a = mu + std * eps
    a_dim = a.shape[-1]
    sum_logstd = jnp.sum(logstd, axis=-1, keepdims=True)
    logp = -0.5 * jnp.sum(eps * eps, -1, keepdims=True) - sum_logstd - 0.5 * a_dim * _LOG_2PI
    ent = 0.5 * a_dim * (1.0 + _LOG_2PI) + sum_logstd[:, 0]
    return a, logp, ent


if __name__ == "__main__":
    key = jax.random.PRNGKey(0)
    k_param, k_state, k_eps = jax.random.split(key, 3)

    B, C, Hs, Ws = 2, 4, 16, 16           # state treated as flattened features
    input_dim = C * Hs * Ws               # 1024
    hidden_dim = (128, 128)
    a_dim = 8

    params = init_params(k_param, input_dim, hidden_dim, a_dim)
    state = jax.random.normal(k_state, (B, C, Hs, Ws), jnp.float32)
    eps = jax.random.normal(k_eps, (B, a_dim), jnp.float32)

    # Stochastic (rsample) path.
    a, aux = sac_policy_forward(state, params, eps=eps, deterministic=False)
    jax.block_until_ready((a, aux["logprobs"], aux["entropy"]))

    a_ref, logp_ref, ent_ref = _reference_forward(state, params, eps)
    np.testing.assert_allclose(np.asarray(a), np.asarray(a_ref), rtol=1e-5, atol=1e-5)
    np.testing.assert_allclose(np.asarray(aux["logprobs"]), np.asarray(logp_ref),
                               rtol=1e-5, atol=1e-5)
    np.testing.assert_allclose(np.asarray(aux["entropy"]), np.asarray(ent_ref),
                               rtol=1e-5, atol=1e-5)

    # Deterministic path (separate eps-less kernel).
    a_d, aux_d = sac_policy_forward(state, params, deterministic=True)
    jax.block_until_ready((a_d, aux_d["logprobs"], aux_d["entropy"]))

    zeros_eps = jnp.zeros((B, a_dim), jnp.float32)
    a_dref, logp_dref, ent_dref = _reference_forward(state, params, zeros_eps)
    np.testing.assert_allclose(np.asarray(a_d), np.asarray(a_dref), rtol=1e-5, atol=1e-5)
    np.testing.assert_allclose(np.asarray(aux_d["logprobs"]), np.asarray(logp_dref),
                               rtol=1e-5, atol=1e-5)
    np.testing.assert_allclose(np.asarray(aux_d["entropy"]), np.asarray(ent_dref),
                               rtol=1e-5, atol=1e-5)

    print("KERNEL_OK")
</pallas_src>

<mosaic_0001>
module attributes {stable_mosaic.version = 11 : i64} {
  func.func @_sac_policy_kernel(%arg0: i32, %arg1: memref<8x1024xf32, #tpu.memory_space<vmem>>, %arg2: memref<1024x128xf32, #tpu.memory_space<vmem>>, %arg3: memref<1x128xf32, #tpu.memory_space<vmem>>, %arg4: memref<128x16xf32, #tpu.memory_space<vmem>>, %arg5: memref<1x16xf32, #tpu.memory_space<vmem>>, %arg6: memref<8x8xf32, #tpu.memory_space<vmem>>, %arg7: memref<8x128xf32, #tpu.memory_space<vmem>>) attributes {dimension_semantics = [#tpu.dimension_semantics<parallel>], iteration_bounds = array<i64: 1>, scalar_prefetch = 0 : i64, scratch_operands = 0 : i64, tpu.core_type = #tpu.core_type<tc>, window_params = [{transform_indices = @transform_0, window_bounds = array<i64: 8, 1024>}, {pipeline_mode = #tpu.pipeline_mode<synchronous>, transform_indices = @transform_1, window_bounds = array<i64: 1024, 128>}, {pipeline_mode = #tpu.pipeline_mode<synchronous>, transform_indices = @transform_2, window_bounds = array<i64: 1, 128>}, {pipeline_mode = #tpu.pipeline_mode<synchronous>, transform_indices = @transform_3, window_bounds = array<i64: 128, 16>}, {pipeline_mode = #tpu.pipeline_mode<synchronous>, transform_indices = @transform_4, window_bounds = array<i64: 1, 16>}, {transform_indices = @transform_5, window_bounds = array<i64: 8, 8>}, {transform_indices = @transform_6, window_bounds = array<i64: 8, 128>}]} {
    %c0 = arith.constant 0 : index
    %c0_0 = arith.constant 0 : index
    %0 = vector.load %arg1[%c0, %c0_0] : memref<8x1024xf32, #tpu.memory_space<vmem>>, vector<8x1024xf32>
    %c0_1 = arith.constant 0 : index
    %c0_2 = arith.constant 0 : index
    %1 = vector.load %arg2[%c0_1, %c0_2] : memref<1024x128xf32, #tpu.memory_space<vmem>>, vector<1024x128xf32>
    %c0_3 = arith.constant 0 : index
    %c0_4 = arith.constant 0 : index
    %2 = vector.load %arg3[%c0_3, %c0_4] : memref<1x128xf32, #tpu.memory_space<vmem>>, vector<1x128xf32>
    %c0_5 = arith.constant 0 : index
    %c0_6 = arith.constant 0 : index
    %3 = vector.load %arg4[%c0_5, %c0_6] : memref<128x16xf32, #tpu.memory_space<vmem>>, vector<128x16xf32>
    %c0_7 = arith.constant 0 : index
    %c0_8 = arith.constant 0 : index
    %4 = vector.load %arg5[%c0_7, %c0_8] : memref<1x16xf32, #tpu.memory_space<vmem>>, vector<1x16xf32>
    %c0_9 = arith.constant 0 : index
    %c0_10 = arith.constant 0 : index
    %5 = vector.load %arg6[%c0_9, %c0_10] : memref<8x8xf32, #tpu.memory_space<vmem>>, vector<8x8xf32>
    %cst = arith.constant dense<0.000000e+00> : vector<8x128xf32>
    %6 = tpu.matmul %0, %1, %cst {dimension_numbers = #tpu.dot_dimension_numbers<[1], [0], [0], [1], [0, 0, 1, 1], [], []>} : vector<8x1024xf32>, vector<1024x128xf32>, vector<8x128xf32> -> vector<8x128xf32>
    %7 = vector.broadcast %2 : vector<1x128xf32> to vector<8x128xf32>
    %8 = arith.addf %6, %7 : vector<8x128xf32>
    %cst_11 = arith.constant 0.000000e+00 : f32
    %9 = vector.broadcast %cst_11 : f32 to vector<8x128xf32>
    %10 = arith.maximumf %8, %9 : vector<8x128xf32>
    %cst_12 = arith.constant dense<0.000000e+00> : vector<8x16xf32>
    %11 = tpu.matmul %10, %3, %cst_12 {dimension_numbers = #tpu.dot_dimension_numbers<[1], [0], [0], [1], [0, 0, 1, 1], [], []>} : vector<8x128xf32>, vector<128x16xf32>, vector<8x16xf32> -> vector<8x16xf32>
    %12 = vector.broadcast %4 : vector<1x16xf32> to vector<8x16xf32>
    %13 = arith.addf %11, %12 : vector<8x16xf32>
    %14 = vector.extract_strided_slice %13 {offsets = [0, 0], sizes = [8, 8], strides = [1, 1]} : vector<8x16xf32> to vector<8x8xf32>
    %15 = math.tanh %14 : vector<8x8xf32>
    %16 = vector.extract_strided_slice %13 {offsets = [0, 8], sizes = [8, 8], strides = [1, 1]} : vector<8x16xf32> to vector<8x8xf32>
    %cst_13 = arith.constant -1.000000e+01 : f32
    %cst_14 = arith.constant 2.000000e+00 : f32
    %17 = vector.broadcast %cst_13 : f32 to vector<8x8xf32>
    %18 = arith.maximumf %17, %16 : vector<8x8xf32>
    %19 = vector.broadcast %cst_14 : f32 to vector<8x8xf32>
    %20 = arith.minimumf %19, %18 : vector<8x8xf32>
    %cst_15 = arith.constant dense<0.000000e+00> : vector<8xf32>
    %21 = vector.multi_reduction <add>, %20, %cst_15 [1] : vector<8x8xf32> to vector<8xf32>
    %22 = vector.shape_cast %21 : vector<8xf32> to vector<8x1xf32>
    %23 = math.exp %20 : vector<8x8xf32>
    %24 = arith.mulf %23, %5 : vector<8x8xf32>
    %25 = arith.addf %15, %24 : vector<8x8xf32>
    %26 = arith.mulf %5, %5 : vector<8x8xf32>
    %cst_16 = arith.constant dense<0.000000e+00> : vector<8xf32>
    %27 = vector.multi_reduction <add>, %26, %cst_16 [1] : vector<8x8xf32> to vector<8xf32>
    %28 = vector.shape_cast %27 : vector<8xf32> to vector<8x1xf32>
    %cst_17 = arith.constant -5.000000e-01 : f32
    %29 = vector.broadcast %cst_17 : f32 to vector<8x1xf32>
    %30 = arith.mulf %29, %28 : vector<8x1xf32>
    %31 = arith.subf %30, %22 : vector<8x1xf32>
    %cst_18 = arith.constant 7.35150814 : f32
    %32 = vector.broadcast %cst_18 : f32 to vector<8x1xf32>
    %33 = arith.subf %31, %32 : vector<8x1xf32>
    %cst_19 = arith.constant 11.3515081 : f32
    %34 = vector.broadcast %cst_19 : f32 to vector<8x1xf32>
    %35 = arith.addf %34, %22 : vector<8x1xf32>
    %cst_20 = arith.constant 0.000000e+00 : f32
    %36 = vector.broadcast %cst_20 : f32 to vector<8x118xf32>
    %37 = tpu.concatenate %25, %33, %35, %36 in 1 : vector<8x8xf32>, vector<8x1xf32>, vector<8x1xf32>, vector<8x118xf32> -> vector<8x128xf32>
    %c0_21 = arith.constant 0 : index
    %c0_22 = arith.constant 0 : index
    %38 = vector.load %arg7[%c0_21, %c0_22] : memref<8x128xf32, #tpu.memory_space<vmem>>, vector<8x128xf32>
    tpu.vector_store %arg7[%c0_21, %c0_22], %37 {strides = array<i32>} : memref<8x128xf32, #tpu.memory_space<vmem>>, vector<8x128xf32>,
    return
  }
  func.func @transform_0(%arg0: i32) -> (i32, i32) {
    %c0_i32 = arith.constant 0 : i32
    %c0_i32_0 = arith.constant 0 : i32
    return %arg0, %c0_i32 : i32, i32
  }
  func.func @transform_1(%arg0: i32) -> (i32, i32) {
    %c0_i32 = arith.constant 0 : i32
    %c0_i32_0 = arith.constant 0 : i32
    %c0_i32_1 = arith.constant 0 : i32
    return %c0_i32, %c0_i32_0 : i32, i32
  }
  func.func @transform_2(%arg0: i32) -> (i32, i32) {
    %c0_i32 = arith.constant 0 : i32
    %c0_i32_0 = arith.constant 0 : i32
    %c0_i32_1 = arith.constant 0 : i32
    return %c0_i32, %c0_i32_0 : i32, i32
  }
  func.func @transform_3(%arg0: i32) -> (i32, i32) {
    %c0_i32 = arith.constant 0 : i32
    %c0_i32_0 = arith.constant 0 : i32
    %c0_i32_1 = arith.constant 0 : i32
    return %c0_i32, %c0_i32_0 : i32, i32
  }
  func.func @transform_4(%arg0: i32) -> (i32, i32) {
    %c0_i32 = arith.constant 0 : i32
    %c0_i32_0 = arith.constant 0 : i32
    %c0_i32_1 = arith.constant 0 : i32
    return %c0_i32, %c0_i32_0 : i32, i32
  }
  func.func @transform_5(%arg0: i32) -> (i32, i32) {
    %c0_i32 = arith.constant 0 : i32
    %c0_i32_0 = arith.constant 0 : i32
    return %arg0, %c0_i32 : i32, i32
  }
  func.func @transform_6(%arg0: i32) -> (i32, i32) {
    %c0_i32 = arith.constant 0 : i32
    %c0_i32_0 = arith.constant 0 : i32
    return %arg0, %c0_i32 : i32, i32
  }
}

</mosaic_0001>

<bundles_post_ra>
// kernel: tpu_custom_call.1
= control target key start
LH: loop header
LB: loop body
LE: loop exit
PB: predicated region body
PF: predicated region fallthrough
CT: control target
= control target key end

     0   :  { %11 = vsyncpa [#allocation3], 0  ;;  %s992_s0 = inlined_call_operand.vmem [shape: f32[8,1024], index: 0, kind: input, shape index: {}]   ;;  %s993_s1 = inlined_call_operand.hbm [shape: f32[1024,128], index: 1, kind: input, shape index: {}]   ;;  %s994_s2 = inlined_call_operand.vmem [shape: f32[1,128], index: 2, kind: input, shape index: {}]   ;;  %s995_s3 = inlined_call_operand.vmem [shape: f32[128,16], index: 3, kind: input, shape index: {}]   ;;  %s996_s4 = inlined_call_operand.vmem [shape: f32[1,16], index: 4, kind: input, shape index: {}]   ;;  %s997_s5 = inlined_call_operand.vmem [shape: f32[8,8], index: 5, kind: input, shape index: {}]   ;;  %s998_s6 = inlined_call_operand.hbm [shape: f32[8,128], index: 6, kind: output, shape index: {}]  }
   0x1   :  { %12 = vsyncpa [#allocation4], 0  ;;  %s858_s21 = smov [#allocation2]  }
   0x2   :  { %s20_s22 = sshll.u32 %s858_s21, 4  ;;  %s21_s22 = int_to_ptr.vmem [resolvable:$true] %s20_s22 }
   0x3   :  { %s822_s23 = scalar_lea.vmem %s21_s22, 16384  ;;  %p827_p1 = scmp.lt.s32.totalorder %s21_s22, %s21_s22 }
   0x4   :  { %p823_p0 = scmp.ne.s32.totalorder %s21_s22, %s822_s23  ;;  %p828_p2 = scmp.lt.s32.totalorder %s822_s23, %s822_s23 }
   0x6   :  { %p829_p3 = por %p828_p2, %p827_p1 }
   0x8   :  { %p830_p4 = pnand %p829_p3, %p823_p0 }
   0xa   :  { %833 = shalt.err (!%p830_p4)
}
   0xb   :  { %s859_s24 = smov 128   ;;  %s860_s25 = smov 8  }
   0xc   :  { %26 = dma.hbm_to_vmem [thread:$0]  %s993_s1, 16384, %s21_s22, [#allocation3], %s859_s24, %s859_s24, %s860_s25  }
   0xd   :  { %854 = dma.done.wait [#allocation3], 16384  }
   0xe   :  { %855 = vsyncadd [#allocation3], 4294950912  ;;  %v77_v0 = vld [vmem:[#allocation2 + $0xf8] sm:$0xff]  ;;  %v76_v4 = vld [vmem:[#allocation2 + $0xf0] sm:$0xff]  ;;  %vm862_vm0 = vmmov 0   ;;  %vm563_vm1 = vcmask 64512  }
   0xf   :  { %v109_v1 = vld [vmem:[#allocation2 + $0x1f8] sm:$0xff]  ;;  %611 = vmatprep.subr.mxu0 %v77_v0  ;;  %v108_v5 = vld [vmem:[#allocation2 + $0x1f0] sm:$0xff]  ;;  %v75_v8 = vld [vmem:[#allocation2 + $0xe8] sm:$0xff]  ;;  %s863_s29 = smov 120   ;;  %vm588_vm2 = vcmask 72704   ;;  %vm590_vm3 = vcmask 80896  }
  0x10   :  { %v61_v2 = vld [vmem:[#allocation2 + $0x78] sm:$0xff]  ;;  %646 = vmatprep.subr.mxu1 %v109_v1  ;;  %v60_v6 = vld [vmem:[#allocation2 + $0x70] sm:$0xff]  ;;  %v107_v9 = vld [vmem:[#allocation2 + $0x1e8] sm:$0xff] }
  0x11   :  { %v93_v3 = vld [vmem:[#allocation2 + $0x178] sm:$0xff]  ;;  %612 = vmatpush3.msra.mxu0 %v61_v2  ;;  %v92_v7 = vld [vmem:[#allocation2 + $0x170] sm:$0xff]  ;;  %v59_v10 = vld [vmem:[#allocation2 + $0x68] sm:$0xff] }
  0x12   :  { %647 = vmatpush3.msra.mxu1 %v93_v3  ;;  %613 = vmatprep.subr.mxu0 %v76_v4  ;;  %v91_v11 = vld [vmem:[#allocation2 + $0x168] sm:$0xff]  ;;  %v74_v12 = vld [vmem:[#allocation2 + $0xe0] sm:$0xff]  ;;  %v73_v16 = vld [vmem:[#allocation2 + $0xd8] sm:$0xff] }
  0x13   :  { %648 = vmatprep.subr.mxu1 %v108_v5  ;;  %614 = vmatpush3.msra.mxu0 %v60_v6  ;;  %v106_v13 = vld [vmem:[#allocation2 + $0x1e0] sm:$0xff]  ;;  %v105_v17 = vld [vmem:[#allocation2 + $0x1d8] sm:$0xff]  ;;  %v72_v20 = vld [vmem:[#allocation2 + $0xd0] sm:$0xff] }
  0x14   :  { %649 = vmatpush3.msra.mxu1 %v92_v7  ;;  %615 = vmatprep.subr.mxu0 %v75_v8  ;;  %v58_v14 = vld [vmem:[#allocation2 + $0x60] sm:$0xff]  ;;  %v57_v18 = vld [vmem:[#allocation2 + $0x58] sm:$0xff]  ;;  %v104_v21 = vld [vmem:[#allocation2 + $0x1d0] sm:$0xff] }
  0x15   :  { %650 = vmatprep.subr.mxu1 %v107_v9  ;;  %v90_v15 = vld [vmem:[#allocation2 + $0x160] sm:$0xff]  ;;  %616 = vmatpush3.msra.mxu0 %v59_v10  ;;  %v89_v19 = vld [vmem:[#allocation2 + $0x158] sm:$0xff]  ;;  %v56_v22 = vld [vmem:[#allocation2 + $0x50] sm:$0xff] }
  0x16   :  { %651 = vmatpush3.msra.mxu1 %v91_v11  ;;  %617 = vmatprep.subr.mxu0 %v74_v12  ;;  %v88_v23 = vld [vmem:[#allocation2 + $0x150] sm:$0xff]  ;;  %v71_v24 = vld [vmem:[#allocation2 + $0xc8] sm:$0xff]  ;;  %v70_v28 = vld [vmem:[#allocation2 + $0xc0] sm:$0xff] }
  0x17   :  { %652 = vmatprep.subr.mxu1 %v106_v13  ;;  %618 = vmatpush3.msra.mxu0 %v58_v14  ;;  %v103_v25 = vld [vmem:[#allocation2 + $0x1c8] sm:$0xff]  ;;  %v102_v29 = vld [vmem:[#allocation2 + $0x1c0] sm:$0xff]  ;;  %v69_v32 = vld [vmem:[#allocation2 + $0xb8] sm:$0xff] }
  0x18   :  { %653 = vmatpush3.msra.mxu1 %v90_v15  ;;  %619 = vmatprep.subr.mxu0 %v73_v16  ;;  %v55_v26 = vld [vmem:[#allocation2 + $0x48] sm:$0xff]  ;;  %v54_v30 = vld [vmem:[#allocation2 + $0x40] sm:$0xff]  ;;  %v101_v33 = vld [vmem:[#allocation2 + $0x1b8] sm:$0xff] }
  0x19   :  { %654 = vmatprep.subr.mxu1 %v105_v17  ;;  %620 = vmatpush3.msra.mxu0 %v57_v18  ;;  %v87_v27 = vld [vmem:[#allocation2 + $0x148] sm:$0xff]  ;;  %v86_v31 = vld [vmem:[#allocation2 + $0x140] sm:$0xff]  ;;  %v53_v34 = vld [vmem:[#allocation2 + $0x38] sm:$0xff] }
  0x1a   :  { %655 = vmatpush3.msra.mxu1 %v89_v19  ;;  %621 = vmatprep.subr.mxu0 %v72_v20  ;;  %v85_v35 = vld [vmem:[#allocation2 + $0x138] sm:$0xff]  ;;  %v68_v36 = vld [vmem:[#allocation2 + $0xb0] sm:$0xff]  ;;  %v67_v40 = vld [vmem:[#allocation2 + $0xa8] sm:$0xff] }
  0x1b   :  { %656 = vmatprep.subr.mxu1 %v104_v21  ;;  %622 = vmatpush3.msra.mxu0 %v56_v22  ;;  %v100_v37 = vld [vmem:[#allocation2 + $0x1b0] sm:$0xff]  ;;  %v99_v41 = vld [vmem:[#allocation2 + $0x1a8] sm:$0xff]  ;;  %v66_v44 = vld [vmem:[#allocation2 + $0xa0] sm:$0xff] }
  0x1c   :  { %657 = vmatpush3.msra.mxu1 %v88_v23  ;;  %623 = vmatprep.subr.mxu0 %v71_v24  ;;  %v52_v38 = vld [vmem:[#allocation2 + $0x30] sm:$0xff]  ;;  %v51_v42 = vld [vmem:[#allocation2 + $0x28] sm:$0xff]  ;;  %v98_v45 = vld [vmem:[#allocation2 + $0x1a0] sm:$0xff] }
  0x1d   :  { %658 = vmatprep.subr.mxu1 %v103_v25  ;;  %624 = vmatpush3.msra.mxu0 %v55_v26  ;;  %v84_v39 = vld [vmem:[#allocation2 + $0x130] sm:$0xff]  ;;  %v83_v43 = vld [vmem:[#allocation2 + $0x128] sm:$0xff]  ;;  %v50_v46 = vld [vmem:[#allocation2 + $0x20] sm:$0xff] }
  0x1e   :  { %659 = vmatpush3.msra.mxu1 %v87_v27  ;;  %625 = vmatprep.subr.mxu0 %v70_v28  ;;  %v82_v47 = vld [vmem:[#allocation2 + $0x120] sm:$0xff]  ;;  %v65_v48 = vld [vmem:[#allocation2 + $0x98] sm:$0xff]  ;;  %v64_v52 = vld [vmem:[#allocation2 + $0x90] sm:$0xff] }
  0x1f   :  { %660 = vmatprep.subr.mxu1 %v102_v29  ;;  %626 = vmatpush3.msra.mxu0 %v54_v30  ;;  %v97_v49 = vld [vmem:[#allocation2 + $0x198] sm:$0xff]  ;;  %v96_v53 = vld [vmem:[#allocation2 + $0x190] sm:$0xff]  ;;  %v63_v56 = vld [vmem:[#allocation2 + $0x88] sm:$0xff] }
  0x20   :  { %661 = vmatpush3.msra.mxu1 %v86_v31  ;;  %627 = vmatprep.subr.mxu0 %v69_v32  ;;  %v49_v50 = vld [vmem:[#allocation2 + $0x18] sm:$0xff]  ;;  %v48_v54 = vld [vmem:[#allocation2 + $0x10] sm:$0xff]  ;;  %v95_v57 = vld [vmem:[#allocation2 + $0x188] sm:$0xff] }
  0x21   :  { %662 = vmatprep.subr.mxu1 %v101_v33  ;;  %628 = vmatpush3.msra.mxu0 %v53_v34  ;;  %v81_v51 = vld [vmem:[#allocation2 + $0x118] sm:$0xff]  ;;  %v80_v55 = vld [vmem:[#allocation2 + $0x110] sm:$0xff]  ;;  %v47_v58 = vld [vmem:[#allocation2 + $0x8] sm:$0xff] }
  0x22   :  { %663 = vmatpush3.msra.mxu1 %v85_v35  ;;  %629 = vmatprep.subr.mxu0 %v68_v36  ;;  %v79_v59 = vld [vmem:[#allocation2 + $0x108] sm:$0xff]  ;;  %v62_v60 = vld [vmem:[#allocation2 + $0x80] sm:$0xff]  ;;  %v41_v2 = vld [vmem:[%s992_s0 + $0x18] sm:$0xff] }
  0x23   :  { %664 = vmatprep.subr.mxu1 %v100_v37  ;;  %630 = vmatpush3.msra.mxu0 %v52_v38  ;;  %v94_v61 = vld [vmem:[#allocation2 + $0x180] sm:$0xff]  ;;  %v39_v63 = vld [vmem:[%s992_s0 + $0x8] sm:$0xff]  ;;  %v141_v3 = vld [vmem:[#allocation2 + $0x2f8] sm:$0xff] }
  0x24   :  { %665 = vmatpush3.msra.mxu1 %v84_v39  ;;  %631 = vmatprep.subr.mxu0 %v67_v40  ;;  %v46_v62 = vld [vmem:[#allocation2] sm:$0xff]  ;;  %v173_v4 = vld [vmem:[#allocation2 + $0x3f8] sm:$0xff]  ;;  %v40_v5 = vld [vmem:[%s992_s0 + $0x10] sm:$0xff] }
  0x25   :  { %666 = vmatprep.subr.mxu1 %v99_v41  ;;  %632 = vmatpush3.msra.mxu0 %v51_v42  ;;  %v78_v0 = vld [vmem:[#allocation2 + $0x100] sm:$0xff]  ;;  %v125_v6 = vld [vmem:[#allocation2 + $0x278] sm:$0xff]  ;;  %v140_v8 = vld [vmem:[#allocation2 + $0x2f0] sm:$0xff] }
  0x26   :  { %667 = vmatpush3.msra.mxu1 %v83_v43  ;;  %633 = vmatprep.subr.mxu0 %v66_v44  ;;  %v38_v1 = vld [vmem:[%s992_s0] sm:$0xff]  ;;  %v157_v7 = vld [vmem:[#allocation2 + $0x378] sm:$0xff]  ;;  %v172_v9 = vld [vmem:[#allocation2 + $0x3f0] sm:$0xff] }
  0x27   :  { %668 = vmatprep.subr.mxu1 %v98_v45  ;;  %634 = vmatpush3.msra.mxu0 %v50_v46  ;;  %v124_v10 = vld [vmem:[#allocation2 + $0x270] sm:$0xff]  ;;  %v139_v12 = vld [vmem:[#allocation2 + $0x2e8] sm:$0xff]  ;;  %v138_v16 = vld [vmem:[#allocation2 + $0x2e0] sm:$0xff] }
  0x28   :  { %669 = vmatpush3.msra.mxu1 %v82_v47  ;;  %635 = vmatprep.subr.mxu0 %v65_v48  ;;  %v156_v11 = vld [vmem:[#allocation2 + $0x370] sm:$0xff]  ;;  %v171_v13 = vld [vmem:[#allocation2 + $0x3e8] sm:$0xff]  ;;  %v170_v17 = vld [vmem:[#allocation2 + $0x3e0] sm:$0xff] }
  0x29   :  { %670 = vmatprep.subr.mxu1 %v97_v49  ;;  %636 = vmatpush3.msra.mxu0 %v49_v50  ;;  %v123_v14 = vld [vmem:[#allocation2 + $0x268] sm:$0xff]  ;;  %v122_v18 = vld [vmem:[#allocation2 + $0x260] sm:$0xff]  ;;  %v137_v20 = vld [vmem:[#allocation2 + $0x2d8] sm:$0xff] }
  0x2a   :  { %671 = vmatpush3.msra.mxu1 %v81_v51  ;;  %637 = vmatprep.subr.mxu0 %v64_v52  ;;  %v155_v15 = vld [vmem:[#allocation2 + $0x368] sm:$0xff]  ;;  %v154_v19 = vld [vmem:[#allocation2 + $0x360] sm:$0xff]  ;;  %v169_v21 = vld [vmem:[#allocation2 + $0x3d8] sm:$0xff] }
  0x2b   :  { %672 = vmatprep.subr.mxu1 %v96_v53  ;;  %638 = vmatpush3.msra.mxu0 %v48_v54  ;;  %v121_v22 = vld [vmem:[#allocation2 + $0x258] sm:$0xff]  ;;  %v136_v24 = vld [vmem:[#allocation2 + $0x2d0] sm:$0xff]  ;;  %v135_v28 = vld [vmem:[#allocation2 + $0x2c8] sm:$0xff] }
  0x2c   :  { %673 = vmatpush3.msra.mxu1 %v80_v55  ;;  %639 = vmatprep.subr.mxu0 %v63_v56  ;;  %v153_v23 = vld [vmem:[#allocation2 + $0x358] sm:$0xff]  ;;  %v168_v25 = vld [vmem:[#allocation2 + $0x3d0] sm:$0xff]  ;;  %v167_v29 = vld [vmem:[#allocation2 + $0x3c8] sm:$0xff] }
  0x2d   :  { %674 = vmatprep.subr.mxu1 %v95_v57  ;;  %640 = vmatpush3.msra.mxu0 %v47_v58  ;;  %v120_v26 = vld [vmem:[#allocation2 + $0x250] sm:$0xff]  ;;  %v119_v30 = vld [vmem:[#allocation2 + $0x248] sm:$0xff]  ;;  %v134_v32 = vld [vmem:[#allocation2 + $0x2c0] sm:$0xff] }
  0x2e   :  { %675 = vmatpush3.msra.mxu1 %v79_v59  ;;  %641 = vmatprep.subr.mxu0 %v62_v60  ;;  %v152_v27 = vld [vmem:[#allocation2 + $0x350] sm:$0xff]  ;;  %v151_v31 = vld [vmem:[#allocation2 + $0x348] sm:$0xff]  ;;  %v166_v33 = vld [vmem:[#allocation2 + $0x3c0] sm:$0xff] }
  0x2f   :  { %676 = vmatprep.subr.mxu1 %v94_v61  ;;  %642 = vmatpush3.msra.mxu0 %v46_v62  ;;  %v118_v34 = vld [vmem:[#allocation2 + $0x240] sm:$0xff]  ;;  %v133_v36 = vld [vmem:[#allocation2 + $0x2b8] sm:$0xff]  ;;  %v132_v40 = vld [vmem:[#allocation2 + $0x2b0] sm:$0xff] }
  0x30   :  { %263 = vmatprep.mubr.f32.mxu0 %v39_v63  ;;  %677 = vmatpush3.msra.mxu1 %v78_v0  ;;  %v150_v35 = vld [vmem:[#allocation2 + $0x340] sm:$0xff]  ;;  %v165_v37 = vld [vmem:[#allocation2 + $0x3b8] sm:$0xff]  ;;  %v164_v41 = vld [vmem:[#allocation2 + $0x3b0] sm:$0xff] }
  0x31   :  { %264 = vmatmul.mubr.f32.vlgmr.msra.gmra.mxu0 %v38_v1  ;;  %333 = vmatprep.mubr.f32.mxu1 %v41_v2  ;;  %v117_v38 = vld [vmem:[#allocation2 + $0x238] sm:$0xff]  ;;  %v116_v42 = vld [vmem:[#allocation2 + $0x230] sm:$0xff]  ;;  %v131_v44 = vld [vmem:[#allocation2 + $0x2a8] sm:$0xff] }
  0x32   :  { %681 = vmatprep.subr.mxu0 %v141_v3  ;;  %716 = vmatprep.subr.mxu1 %v173_v4  ;;  %v149_v39 = vld [vmem:[#allocation2 + $0x338] sm:$0xff]  ;;  %v148_v43 = vld [vmem:[#allocation2 + $0x330] sm:$0xff]  ;;  %v163_v45 = vld [vmem:[#allocation2 + $0x3a8] sm:$0xff] }
  0x33   :  { %334 = vmatmul.mubr.f32.vlgmr.msra.gmra.mxu1 %v40_v5  ;;  %682 = vmatpush3.msra.mxu0 %v125_v6  ;;  %v115_v46 = vld [vmem:[#allocation2 + $0x228] sm:$0xff]  ;;  %v130_v48 = vld [vmem:[#allocation2 + $0x2a0] sm:$0xff]  ;;  %v129_v52 = vld [vmem:[#allocation2 + $0x298] sm:$0xff] }
  0x34   :  { %717 = vmatpush3.msra.mxu1 %v157_v7  ;;  %683 = vmatprep.subr.mxu0 %v140_v8  ;;  %v147_v47 = vld [vmem:[#allocation2 + $0x328] sm:$0xff]  ;;  %v162_v49 = vld [vmem:[#allocation2 + $0x3a0] sm:$0xff]  ;;  %v161_v53 = vld [vmem:[#allocation2 + $0x398] sm:$0xff] }
  0x35   :  { %718 = vmatprep.subr.mxu1 %v172_v9  ;;  %684 = vmatpush3.msra.mxu0 %v124_v10  ;;  %v114_v50 = vld [vmem:[#allocation2 + $0x220] sm:$0xff]  ;;  %v113_v54 = vld [vmem:[#allocation2 + $0x218] sm:$0xff]  ;;  %v128_v56 = vld [vmem:[#allocation2 + $0x290] sm:$0xff]  ;;  %v861_v9 = vmov 0.0  }
  0x36   :  { %719 = vmatpush3.msra.mxu1 %v156_v11  ;;  %685 = vmatprep.subr.mxu0 %v139_v12  ;;  %v146_v51 = vld [vmem:[#allocation2 + $0x320] sm:$0xff]  ;;  %v145_v55 = vld [vmem:[#allocation2 + $0x318] sm:$0xff]  ;;  %v160_v57 = vld [vmem:[#allocation2 + $0x390] sm:$0xff] }
  0x37   :  { %720 = vmatprep.subr.mxu1 %v171_v13  ;;  %686 = vmatpush3.msra.mxu0 %v123_v14  ;;  %v112_v58 = vld [vmem:[#allocation2 + $0x210] sm:$0xff]  ;;  %v127_v60 = vld [vmem:[#allocation2 + $0x288] sm:$0xff]  ;;  %v126_v0 = vld [vmem:[#allocation2 + $0x280] sm:$0xff] }
  0x38   :  { %721 = vmatpush3.msra.mxu1 %v155_v15  ;;  %687 = vmatprep.subr.mxu0 %v138_v16  ;;  %v144_v59 = vld [vmem:[#allocation2 + $0x310] sm:$0xff]  ;;  %v159_v61 = vld [vmem:[#allocation2 + $0x388] sm:$0xff]  ;;  %v158_v1 = vld [vmem:[#allocation2 + $0x380] sm:$0xff] }
  0x39   :  { %722 = vmatprep.subr.mxu1 %v170_v17  ;;  %688 = vmatpush3.msra.mxu0 %v122_v18  ;;  %v111_v62 = vld [vmem:[#allocation2 + $0x208] sm:$0xff]  ;;  %v110_v2 = vld [vmem:[#allocation2 + $0x200] sm:$0xff]  ;;  %v45_v5 = vld [vmem:[%s992_s0 + $0x38] sm:$0xff] }
  0x3a   :  { %723 = vmatpush3.msra.mxu1 %v154_v19  ;;  %689 = vmatprep.subr.mxu0 %v137_v20  ;;  %v143_v63 = vld [vmem:[#allocation2 + $0x308] sm:$0xff]  ;;  %v142_v4 = vld [vmem:[#allocation2 + $0x300] sm:$0xff]  ;;  %v44_v7 = vld [vmem:[%s992_s0 + $0x30] sm:$0xff] }
  0x3b   :  { %724 = vmatprep.subr.mxu1 %v169_v21  ;;  %690 = vmatpush3.msra.mxu0 %v121_v22  ;;  %v43_v3 = vld [vmem:[%s992_s0 + $0x28] sm:$0xff]  ;;  %v42_v6 = vld [vmem:[%s992_s0 + $0x20] sm:$0xff]  ;;  %v190_v8 = vld [vmem:[%s995_s3 + $0x78] sm:$0xff] }
  0x3c   :  { %725 = vmatpush3.msra.mxu1 %v153_v23  ;;  %691 = vmatprep.subr.mxu0 %v136_v24  ;;  %v189_v10 = vld [vmem:[%s995_s3 + $0x70] sm:$0xff]  ;;  %v188_v11 = vld [vmem:[%s995_s3 + $0x68] sm:$0xff]  ;;  %v187_v12 = vld [vmem:[%s995_s3 + $0x60] sm:$0xff] }
  0x3d   :  { %726 = vmatprep.subr.mxu1 %v168_v25  ;;  %692 = vmatpush3.msra.mxu0 %v120_v26  ;;  %v186_v13 = vld [vmem:[%s995_s3 + $0x58] sm:$0xff]  ;;  %v185_v14 = vld [vmem:[%s995_s3 + $0x50] sm:$0xff]  ;;  %v184_v15 = vld [vmem:[%s995_s3 + $0x48] sm:$0xff] }
  0x3e   :  { %727 = vmatpush3.msra.mxu1 %v152_v27  ;;  %693 = vmatprep.subr.mxu0 %v135_v28  ;;  %v183_v16 = vld [vmem:[%s995_s3 + $0x40] sm:$0xff]  ;;  %v182_v17 = vld [vmem:[%s995_s3 + $0x38] sm:$0xff]  ;;  %v181_v18 = vld [vmem:[%s995_s3 + $0x30] sm:$0xff] }
  0x3f   :  { %728 = vmatprep.subr.mxu1 %v167_v29  ;;  %694 = vmatpush3.msra.mxu0 %v119_v30  ;;  %v180_v19 = vld [vmem:[%s995_s3 + $0x28] sm:$0xff]  ;;  %v179_v20 = vld [vmem:[%s995_s3 + $0x20] sm:$0xff]  ;;  %v178_v21 = vld [vmem:[%s995_s3 + $0x18] sm:$0xff] }
  0x40   :  { %729 = vmatpush3.msra.mxu1 %v151_v31  ;;  %695 = vmatprep.subr.mxu0 %v134_v32  ;;  %v177_v22 = vld [vmem:[%s995_s3 + $0x10] sm:$0xff]  ;;  %v176_v23 = vld [vmem:[%s995_s3 + $0x8] sm:$0xff]  ;;  %v175_v24 = vld [vmem:[%s995_s3] sm:$0xff] }
  0x41   :  { %730 = vmatprep.subr.mxu1 %v166_v33  ;;  %696 = vmatpush3.msra.mxu0 %v118_v34  ;;  %v608_v29 = vld [vmem:[%s994_s2] ss:$0 sm:$0xff] }
  0x42   :  { %731 = vmatpush3.msra.mxu1 %v150_v35  ;;  %697 = vmatprep.subr.mxu0 %v133_v36 }
  0x43   :  { %732 = vmatprep.subr.mxu1 %v165_v37  ;;  %698 = vmatpush3.msra.mxu0 %v117_v38 }
  0x44   :  { %733 = vmatpush3.msra.mxu1 %v149_v39  ;;  %699 = vmatprep.subr.mxu0 %v132_v40 }
  0x45   :  { %734 = vmatprep.subr.mxu1 %v164_v41  ;;  %700 = vmatpush3.msra.mxu0 %v116_v42 }
  0x46   :  { %735 = vmatpush3.msra.mxu1 %v148_v43  ;;  %701 = vmatprep.subr.mxu0 %v131_v44  ;;  %v192_v43 = vld [vmem:[%s997_s5] sm:$0xff] }
  0x47   :  { %736 = vmatprep.subr.mxu1 %v163_v45  ;;  %702 = vmatpush3.msra.mxu0 %v115_v46  ;;  %v579_v44 = vmul.f32 %v192_v43, %v192_v43  ;;  %v609_v46 = vld [vmem:[%s996_s4] ss:$0 sm:$0xff]  ;;  %s864_s4 = smov [#allocation5]  }
  0x48   :  { %737 = vmatpush3.msra.mxu1 %v147_v47  ;;  %703 = vmatprep.subr.mxu0 %v130_v48  ;;  %s599_s5 = sshll.u32 %s864_s4, 4  ;;  %s600_s5 = int_to_ptr.vmem [resolvable:$true] %s599_s5 }
  0x49   :  { %738 = vmatprep.subr.mxu1 %v162_v49  ;;  %704 = vmatpush3.msra.mxu0 %v114_v50  ;;  %v580_v45 = vsel %vm563_vm1, %v579_v44, 0.0  ;;  %p839_p6 = scmp.lt.s32.totalorder %s600_s5, %s600_s5 }
  0x4a   :  { %739 = vmatpush3.msra.mxu1 %v146_v51  ;;  %705 = vmatprep.subr.mxu0 %v129_v52 }
  0x4b   :  { %740 = vmatprep.subr.mxu1 %v161_v53  ;;  %706 = vmatpush3.msra.mxu0 %v113_v54 }
  0x4c   :  { %741 = vmatpush3.msra.mxu1 %v145_v55  ;;  %707 = vmatprep.subr.mxu0 %v128_v56 }
  0x4d   :  { %742 = vmatprep.subr.mxu1 %v160_v57  ;;  %708 = vmatpush3.msra.mxu0 %v112_v58 }
  0x4e   :  { %743 = vmatpush3.msra.mxu1 %v144_v59  ;;  %709 = vmatprep.subr.mxu0 %v127_v60 }
  0x4f   :  { %744 = vmatprep.subr.mxu1 %v159_v61  ;;  %710 = vmatpush3.msra.mxu0 %v111_v62 }
  0x50   :  { %745 = vmatpush3.msra.mxu1 %v143_v63  ;;  %711 = vmatprep.subr.mxu0 %v126_v0 }
  0x51   :  { %746 = vmatprep.subr.mxu1 %v158_v1  ;;  %712 = vmatpush3.msra.mxu0 %v110_v2 }
  0x52   :  { %403 = vmatprep.mubr.f32.mxu0 %v43_v3  ;;  %747 = vmatpush3.msra.mxu1 %v142_v4 }
  0x53   :  { %473 = vmatprep.mubr.f32.mxu1 %v45_v5  ;;  %404 = vmatmul.mubr.f32.vlgmr.msra.gmra.mxu0 %v42_v6 }
  0x54   :  { %474 = vmatmul.mubr.f32.vlgmr.msra.gmra.mxu1 %v44_v7  ;;  %768 = vmatprep.subr.mxu0 %v861_v9 }
  0x55   :  { %769 = vmatpush3.msra.mxu0 %v190_v8  ;;  %800 = vmatprep.mubr.msk.f32.mxu0 %vm862_vm0, %v861_v9 }
  0x56   :  { %770 = vmatprep.subr.mxu0 %v861_v9  ;;  %581 = vadd.xlane.f32.xlu1 %v580_v45 }
  0x57   :  { %771 = vmatpush3.msra.mxu0 %v189_v10 }
  0x58   :  { %772 = vmatprep.subr.mxu0 %v861_v9 }
  0x59   :  { %773 = vmatpush3.msra.mxu0 %v188_v11 }
  0x5a   :  { %774 = vmatprep.subr.mxu0 %v861_v9 }
  0x5b   :  { %775 = vmatpush3.msra.mxu0 %v187_v12 }
  0x5c   :  { %776 = vmatprep.subr.mxu0 %v861_v9 }
  0x5d   :  { %777 = vmatpush3.msra.mxu0 %v186_v13 }
  0x5e   :  { %778 = vmatprep.subr.mxu0 %v861_v9 }
  0x5f   :  { %779 = vmatpush3.msra.mxu0 %v185_v14 }
  0x60   :  { %780 = vmatprep.subr.mxu0 %v861_v9 }
  0x61   :  { %781 = vmatpush3.msra.mxu0 %v184_v15 }
  0x62   :  { %782 = vmatprep.subr.mxu0 %v861_v9 }
  0x63   :  { %783 = vmatpush3.msra.mxu0 %v183_v16 }
  0x64   :  { %784 = vmatprep.subr.mxu0 %v861_v9 }
  0x65   :  { %785 = vmatpush3.msra.mxu0 %v182_v17 }
  0x66   :  { %786 = vmatprep.subr.mxu0 %v861_v9 }
  0x67   :  { %787 = vmatpush3.msra.mxu0 %v181_v18 }
  0x68   :  { %788 = vmatprep.subr.mxu0 %v861_v9 }
  0x69   :  { %789 = vmatpush3.msra.mxu0 %v180_v19 }
  0x6a   :  { %790 = vmatprep.subr.mxu0 %v861_v9 }
  0x6b   :  { %791 = vmatpush3.msra.mxu0 %v179_v20 }
  0x6c   :  { %792 = vmatprep.subr.mxu0 %v861_v9 }
  0x6d   :  { %793 = vmatpush3.msra.mxu0 %v178_v21 }
  0x6e   :  { %794 = vmatprep.subr.mxu0 %v861_v9 }
  0x6f   :  { %795 = vmatpush3.msra.mxu0 %v177_v22 }
  0x70   :  { %796 = vmatprep.subr.mxu0 %v861_v9 }
  0x71   :  { %797 = vmatpush3.msra.mxu0 %v176_v23 }
  0x72   :  { %798 = vmatprep.subr.mxu0 %v861_v9 }
  0x73   :  { %799 = vmatpush3.msra.mxu0 %v175_v24 }
  0xdf   :  { %v582_v58 = vpop.xlane.xlu1 %581 }
  0xe0   :  { %v583_v59 = vmul.f32 -0.5, %v582_v58 }
  0xf1   :  { %v643_v25 = vpop.f32.mrf.mxu0 }
  0xf3   :  { %v678_v26 = vpop.f32.mrf.mxu1  ;;  %v644_v27 = vpop.f32.mrf.mxu0 }
  0xf4   :  { %v645_v28 = vadd.f32 %v644_v27, %v643_v25 }
  0xf5   :  { %v679_v30 = vpop.f32.mrf.mxu1 }
  0xf6   :  { %v266_v31 = vadd.f32 %v645_v28, %v608_v29  ;;  %v680_v32 = vadd.f32 %v679_v30, %v678_v26 }
  0xf8   :  { %v336_v37 = vadd.f32 %v680_v32, %v266_v31 }
 0x113   :  { %v713_v33 = vpop.f32.mrf.mxu0 }
 0x114   :  { %v748_v34 = vpop.f32.mrf.mxu1 }
 0x115   :  { %v714_v35 = vpop.f32.mrf.mxu0 }
 0x116   :  { %v749_v36 = vpop.f32.mrf.mxu1  ;;  %v715_v38 = vadd.f32 %v714_v35, %v713_v33 }
 0x117   :  { %v750_v40 = vadd.f32 %v749_v36, %v748_v34 }
 0x118   :  { %v406_v39 = vadd.f32 %v715_v38, %v336_v37 }
 0x11a   :  { %v476_v41 = vadd.f32 %v750_v40, %v406_v39 }
 0x11c   :  { %v479_v42 = vmax.f32 %v476_v41, 0.0 }
 0x11e   :  { %801 = vmatmul.mubr.f32.vlgmr.msra.gmra.mxu0 %v479_v42 }
 0x1de   :  { %v552_v47 = vpop.f32.mrf.mxu0 }
 0x1df   :  { %v553_v48 = vadd.f32 %v609_v46, %v552_v47 }
 0x1e0   :  { %v802_v49 = vpop.f32.mrf.mxu0 }
 0x1e1   :  { %v557_v50 = vmax.f32 %v553_v48, -10.0 }
 0x1e3   :  { %v558_v51 = vmin.f32 %v557_v50, 2.0 }
 0x1e5   :  { %560 = vrot.lane.b32.xlu0 %v558_v51, %s863_s29  ;;  %v567_v52 = vmul.f32 1.442695, %v558_v51 }
 0x1e7   :  { %810 = vpow2.f32 %v567_v52 }
 0x1e8   :  { %812 = vtanh.f32 %v553_v48 }
 0x1e9   :  { %570 = vrot.lane.b32.xlu0 %v192_v43, %s860_s25  ;;  %s834_s25 = scalar_lea.vmem %s600_s5, 128 }
 0x1ea   :  { %p835_p5 = scmp.ne.s32.totalorder %s600_s5, %s834_s25  ;;  %p840_p7 = scmp.lt.s32.totalorder %s834_s25, %s834_s25 }
 0x1ec   :  { %p841_p8 = por %p840_p7, %p839_p6 }
 0x1ee   :  { %p842_p9 = pnand %p841_p8, %p835_p5 }
 0x1f4   :  { %v811_v55 = vpop.eup %810 }
 0x1f5   :  { %v813_v63 = vpop.eup %812 }
 0x257   :  { %v561_v53 = vpop.permute.xlu0 %560 }
 0x258   :  { %v564_v54 = vsel %vm563_vm1, %v561_v53, 0.0 }
 0x259   :  { %565 = vadd.xlane.f32.xlu1 %v564_v54 }
 0x25b   :  { %v571_v56 = vpop.permute.xlu0 %570 }
 0x25c   :  { %v573_v57 = vmul.f32 %v811_v55, %v571_v56 }
 0x25e   :  { %575 = vrot.lane.b32.xlu0 %v573_v57, %s863_s29 }
 0x2d0   :  { %v576_v60 = vpop.permute.xlu0 %575 }
 0x2d1   :  { %v578_v0 = vadd.f32 %v813_v63, %v576_v60 }
 0x2e2   :  { %v566_v61 = vpop.xlane.xlu1 %565 }
 0x2e3   :  { %v584_v62 = vsub.f32 %v583_v59, %v566_v61  ;;  %v586_v2 = vadd.f32 11.351508, %v566_v61 }
 0x2e5   :  { %v610_v1 = vadd.f32 -7.351508, %v584_v62 }
 0x2e7   :  { %v587_v3 = vsel %vm563_vm1, %v578_v0, %v610_v1 }
 0x2e8   :  { %v589_v4 = vsel %vm588_vm2, %v587_v3, %v586_v2 }
 0x2e9   :  { %v591_v5 = vsel %vm590_vm3, %v589_v4, 0.0 }
 0x2ea   :  { %592 = vst [vmem:[#allocation5] sm:$0xff] %v591_v5 }
 0x2eb   :  { %845 = shalt.err (!%p842_p9)
}
 0x2ec   :  { %602 = dma.vmem_to_hbm [thread:$0]  %s600_s5, 128, %s998_s6, [#allocation4]  }
 0x2ed   :  { %856 = dma.done.wait [#allocation4], 128  }
 0x2ee   :  { %857 = vsyncadd [#allocation4], 4294967168 }
 0x2ef   :  { %606 = vsyncpa [#allocation3], 1 }
 0x2f0   :  { %607 = vsyncpa [#allocation4], 1 }

</bundles_post_ra>
